<compile_context>
chip_gen: v7x
topology: tpu7x:2x2x1
jax: 0.10.0
libtpu: 0.0.40
codegen_flags: <defaults>
</compile_context>

<pallas_src>
import functools

import jax
import jax.numpy as jnp
from jax.experimental import pallas as pl
from jax.experimental.pallas import tpu as pltpu

_BN_EPS = 1e-5
_MIB = 1 << 20


def _round_up(x, m):
    return (x + m - 1) // m * m


def _cdiv(a, b):
    return (a + b - 1) // b


def _apply_act(x, act):
    if act == "leaky_relu":
        return jnp.where(x > 0, x, 0.2 * x)
    if act == "relu":
        return jnp.maximum(x, 0.0)
    if act == "tanh":
        return jnp.tanh(x)
    return x


# ----------------------------------------------------------------------------
# Fused matmul + shift + activation kernels
# ----------------------------------------------------------------------------
def _matmul_resident_kernel(a_ref, b_ref, t_ref, o_ref, *, act):
    # Full-K dot in one shot: no accumulator scratch, no k-step branches.
    acc = jnp.dot(a_ref[...], b_ref[...], preferred_element_type=jnp.float32)
    acc = _apply_act(acc + t_ref[...], act)
    o_ref[...] = acc.astype(o_ref.dtype)


def _matmul_ktiled_kernel(a_ref, b_ref, t_ref, o_ref, acc_ref, *, act):
    k = pl.program_id(2)

    @pl.when(k == 0)
    def _init():
        acc_ref[...] = jnp.zeros_like(acc_ref)

    acc_ref[...] += jnp.dot(a_ref[...], b_ref[...],
                            preferred_element_type=jnp.float32)

    @pl.when(k == pl.num_programs(2) - 1)
    def _epilogue():
        acc = _apply_act(acc_ref[...] + t_ref[...], act)
        o_ref[...] = acc.astype(o_ref.dtype)


def _pick_tm(M):
    if M <= 256:
        return M                              # single block; block == full dim is always legal
    if M <= 1024:
        return _round_up(_cdiv(M, 2), 8)      # >= 2 M-blocks so both v7x TensorCores get work
    return 512


def _pick_tn(N):
    return N if N <= 512 else 512             # full output-channel width for UNet layers


def fused_matmul_bias_act(a, b, shift, act="none", out_dtype=jnp.bfloat16):
    """act((a @ b) + shift);  a:(M,K), b:(K,N), shift:(N,) -> (M,N) out_dtype.

    Operands go to the MXU as bfloat16; accumulation/epilogue in float32.
    """
    M, K = a.shape
    K2, N = b.shape
    assert K == K2 and shift.shape == (N,)

    a_bf = a.astype(jnp.bfloat16)
    b_bf = b.astype(jnp.bfloat16)
    t = shift.astype(jnp.float32).reshape(1, N)
    out_sz = jnp.dtype(out_dtype).itemsize

    tm = _pick_tm(M)
    tn = _pick_tn(N)
    grid_m = _cdiv(M, tm)
    grid_n = _cdiv(N, tn)

    # Double-buffered footprint of the resident-weight variant.
    resident_fp = 2 * (tm * K + K * tn) * 2 + 2 * tm * tn * out_sz + 2 * tn * 4

    if resident_fp <= 40 * _MIB:
        # Resident-weight path: B is DMA'd once (grid_n == 1 for UNet layers),
        # A streams exactly once, both grid axes are "parallel".
        cost = pl.CostEstimate(
            flops=int(2 * M * K * N),
            transcendentals=int(M * N) if act == "tanh" else 0,
            bytes_accessed=int(M * K * 2
                               + K * N * 2 * (1 if grid_n == 1 else grid_m)
                               + M * N * out_sz + N * 4),
        )
        cp = dict(dimension_semantics=("parallel", "parallel"))
        if resident_fp + 2 * _MIB > 16 * _MIB:    # would exceed v5e default scoped VMEM
            cp["vmem_limit_bytes"] = int(min(resident_fp + 8 * _MIB, 48 * _MIB))
        return pl.pallas_call(
            functools.partial(_matmul_resident_kernel, act=act),
            out_shape=jax.ShapeDtypeStruct((M, N), out_dtype),
            grid_spec=pltpu.PrefetchScalarGridSpec(
                num_scalar_prefetch=0,
                grid=(grid_m, grid_n),
                in_specs=[
                    pl.BlockSpec((tm, K), lambda i, j: (i, 0)),
                    pl.BlockSpec((K, tn), lambda i, j: (0, j)),
                    pl.BlockSpec((1, tn), lambda i, j: (0, j)),
                ],
                out_specs=pl.BlockSpec((tm, tn), lambda i, j: (i, j)),
            ),
            compiler_params=pltpu.CompilerParams(**cp),
            cost_estimate=cost,
        )(a_bf, b_bf, t)

    # ---- Fallback for very large K: K-tiled grid with an f32 VMEM accumulator.
    tk = min(2048, _round_up(K, 128))
    Kp = _round_up(K, tk)
    if Kp != K:
        # K MUST stay zero-padded here: garbage K would corrupt the accumulation.
        a_bf = jnp.pad(a_bf, ((0, 0), (0, Kp - K)))
        b_bf = jnp.pad(b_bf, ((0, Kp - K), (0, 0)))
    grid_k = Kp // tk
    fp = 2 * (tm * tk + tk * tn) * 2 + tm * tn * 4 + 2 * tm * tn * out_sz + 2 * tn * 4
    cost = pl.CostEstimate(
        flops=int(2 * M * Kp * N),
        transcendentals=int(M * N) if act == "tanh" else 0,
        bytes_accessed=int(M * Kp * 2 * grid_n + Kp * N * 2 * grid_m
                           + M * N * out_sz + N * 4),
    )
    cp = dict(dimension_semantics=("parallel", "parallel", "arbitrary"))
    if fp + 2 * _MIB > 16 * _MIB:
        cp["vmem_limit_bytes"] = int(min(fp + 8 * _MIB, 48 * _MIB))
    return pl.pallas_call(
        functools.partial(_matmul_ktiled_kernel, act=act),
        out_shape=jax.ShapeDtypeStruct((M, N), out_dtype),
        grid_spec=pltpu.PrefetchScalarGridSpec(
            num_scalar_prefetch=0,
            grid=(grid_m, grid_n, grid_k),
            in_specs=[
                pl.BlockSpec((tm, tk), lambda i, j, k: (i, k)),
                pl.BlockSpec((tk, tn), lambda i, j, k: (k, j)),
                pl.BlockSpec((1, tn), lambda i, j, k: (0, j)),
            ],
            out_specs=pl.BlockSpec((tm, tn), lambda i, j, k: (i, j)),
            scratch_shapes=[pltpu.VMEM((tm, tn), jnp.float32)],
        ),
        compiler_params=pltpu.CompilerParams(**cp),
        cost_estimate=cost,
    )(a_bf, b_bf, t)


# ----------------------------------------------------------------------------
# Conv2d(4, 2, 1, bias=False)  ->  im2col GEMM
# ----------------------------------------------------------------------------
def conv2d_down(x, w, scale, shift, act, out_dtype=jnp.bfloat16):
    """x: (B,H,W,C) NHWC;  w: (O,C,4,4) (PyTorch Conv2d layout)."""
    O, C, kh, kw = w.shape
    assert (kh, kw) == (4, 4)
    stride, pad = 2, 1
    # Cast to bf16 BEFORE im2col so the duplicated patch matrix is bf16.
    xp = jnp.pad(x.astype(jnp.bfloat16), ((0, 0), (pad, pad), (pad, pad), (0, 0)))
    B, Hp, Wp, _ = xp.shape
    Ho = (Hp - kh) // stride + 1
    Wo = (Wp - kw) // stride + 1
    # TODO(synk): patch extraction stays in XLA; halo-DMA fusion only pays off
    # at much larger C/H than these blocks.
    cols = [xp[:, i:i + (Ho - 1) * stride + 1:stride,
               j:j + (Wo - 1) * stride + 1:stride, :]
            for i in range(kh) for j in range(kw)]
    patches = jnp.concatenate(cols, axis=-1).reshape(B * Ho * Wo, kh * kw * C)
    w_mat = jnp.transpose(w, (2, 3, 1, 0)).reshape(kh * kw * C, O)
    w_mat = (w_mat * scale[None, :]).astype(jnp.bfloat16)   # fold BN scale (f32) then bf16
    y = fused_matmul_bias_act(patches, w_mat, shift, act, out_dtype)
    return y.reshape(B, Ho, Wo, O)


# ----------------------------------------------------------------------------
# ConvTranspose2d(4, 2, 1, bias=False)  ->  sub-pixel GEMM (no zero-stuffing)
# ----------------------------------------------------------------------------
def conv_transpose2d_up(x, w, scale, shift, act, out_dtype=jnp.bfloat16):
    """x: (B,H,W,Cin) NHWC;  w: (Cin,Cout,4,4) (PyTorch ConvTranspose2d layout).

    out[b, 2p+a, 2q+c, :] is a 2x2 stride-1 conv of the un-dilated input, one
    sub-kernel per output phase (a, c); all 4 phases share one GEMM.
    """
    Cin, Cout, kh, kw = w.shape
    assert (kh, kw) == (4, 4)
    B, H, W, _ = x.shape

    # 2x2 stride-1 patches of the 1-padded input (bf16 before materialization).
    xp = jnp.pad(x.astype(jnp.bfloat16), ((0, 0), (1, 1), (1, 1), (0, 0)))
    cols = [xp[:, dr:dr + H + 1, dc:dc + W + 1, :]
            for dr in range(2) for dc in range(2)]
    patches = jnp.concatenate(cols, axis=-1).reshape(B * (H + 1) * (W + 1), 4 * Cin)

    # 4 sub-pixel phase kernels stacked along the output (N) dimension.
    kr = ((3, 1), (2, 0))     # kernel-tap index for (phase, patch-offset)
    phase_w = []
    for a in range(2):
        for c in range(2):
            sub = jnp.stack(
                [jnp.stack([w[:, :, kr[a][dr], kr[c][dc]] for dc in range(2)], axis=0)
                 for dr in range(2)], axis=0)            # (2, 2, Cin, Cout)
            phase_w.append(sub.reshape(4 * Cin, Cout))
    w_big = jnp.concatenate(phase_w, axis=1)             # (4*Cin, 4*Cout)
    w_big = (w_big * jnp.tile(scale, 4)[None, :]).astype(jnp.bfloat16)
    shift_big = jnp.tile(shift, 4)

    y = fused_matmul_bias_act(patches, w_big, shift_big, act, out_dtype)
    y = y.reshape(B, H + 1, W + 1, 2, 2, Cout)

    # Phase interleave (now bf16 -> half the HBM traffic of the old f32 pass).
    # TODO(synk): the (p+a, q+c) offsets keep this from being a free reshape;
    # XLA fuses the slices + stacks into a single copy over the bf16 tensor.
    y00 = y[:, 0:H,     0:W,     0, 0, :]
    y01 = y[:, 0:H,     1:W + 1, 0, 1, :]
    y10 = y[:, 1:H + 1, 0:W,     1, 0, :]
    y11 = y[:, 1:H + 1, 1:W + 1, 1, 1, :]
    even_rows = jnp.stack([y00, y01], axis=-2)           # (B, H, W, 2, Cout)
    odd_rows = jnp.stack([y10, y11], axis=-2)            # (B, H, W, 2, Cout)
    z = jnp.stack([even_rows, odd_rows], axis=2)         # (B, H, 2, W, 2, Cout)
    return z.reshape(B, 2 * H, 2 * W, Cout)


# ----------------------------------------------------------------------------
# UNetBlock forward
# ----------------------------------------------------------------------------
def _bn_fold(bn, use_bn, out_ch):
    if not use_bn:
        return jnp.ones((out_ch,), jnp.float32), jnp.zeros((out_ch,), jnp.float32)
    gamma, beta, mean, var = bn
    scale = gamma / jnp.sqrt(var + _BN_EPS)
    return scale, beta - mean * scale


def unet_block_forward_nhwc(params, x_nhwc, *, down=True, use_bn=True,
                            use_dropout=False, out_dtype=jnp.bfloat16):
    """UNetBlock.forward in NHWC (keep the network NHWC end-to-end)."""
    del use_dropout  # TODO(synk): Dropout(0.5) is identity in inference mode.
    w = params['w']
    out_ch = w.shape[0] if down else w.shape[1]
    scale, shift = _bn_fold(params.get('bn'), use_bn, out_ch)
    act = 'leaky_relu' if down else 'relu'
    if down:
        return conv2d_down(x_nhwc, w, scale, shift, act, out_dtype)
    return conv_transpose2d_up(x_nhwc, w, scale, shift, act, out_dtype)


def unet_block_forward(params, x_nchw, *, down=True, use_bn=True,
                       use_dropout=False, out_dtype=jnp.bfloat16):
    """NCHW wrapper matching the PyTorch module's layout (single block)."""
    x = jnp.transpose(x_nchw, (0, 2, 3, 1))
    y = unet_block_forward_nhwc(params, x, down=down, use_bn=use_bn,
                                use_dropout=use_dropout, out_dtype=out_dtype)
    return jnp.transpose(y, (0, 3, 1, 2))


# Pure-XLA reference (f32, NHWC) for the numerics check.
def unet_block_reference_nhwc(params, x_nhwc, *, down=True, use_bn=True):
    x = x_nhwc.astype(jnp.float32)
    w = params['w'].astype(jnp.float32)
    if down:
        rhs = jnp.transpose(w, (2, 3, 1, 0))                        # HWIO
        y = jax.lax.conv_general_dilated(
            x, rhs, (2, 2), [(1, 1), (1, 1)],
            dimension_numbers=('NHWC', 'HWIO', 'NHWC'))
        out_ch = w.shape[0]
    else:
        rhs = jnp.transpose(w[:, :, ::-1, ::-1], (2, 3, 0, 1))      # HWIO
        y = jax.lax.conv_general_dilated(
            x, rhs, (1, 1), [(2, 2), (2, 2)], lhs_dilation=(2, 2),
            dimension_numbers=('NHWC', 'HWIO', 'NHWC'))
        out_ch = w.shape[1]
    scale, shift = _bn_fold(params.get('bn'), use_bn, out_ch)
    y = y * scale + shift
    return jnp.where(y > 0, y, 0.2 * y) if down else jnp.maximum(y, 0.0)


def _check_close(y, ref, tag):
    """Relative-error check (bf16 MXU operands + bf16 output)."""
    err = float(jnp.max(jnp.abs(y.astype(jnp.float32) - ref)))
    scale = float(jnp.max(jnp.abs(ref)))
    assert err <= 0.05 * scale + 0.02, (tag, err, scale)


# ----------------------------------------------------------------------------
# Parameter init (deterministic, synthetic)
# ----------------------------------------------------------------------------
def init_unet_block_params(key, in_ch, out_ch, *, down=True, use_bn=True):
    k_w, k_bn = jax.random.split(key)
    if down:
        w = jax.random.normal(k_w, (out_ch, in_ch, 4, 4), jnp.float32) * 0.05
    else:
        w = jax.random.normal(k_w, (in_ch, out_ch, 4, 4), jnp.float32) * 0.05
    p = {'w': w}
    if use_bn:
        kg, kb, km, kv = jax.random.split(k_bn, 4)
        p['bn'] = (1.0 + 0.1 * jax.random.normal(kg, (out_ch,), jnp.float32),
                   0.1 * jax.random.normal(kb, (out_ch,), jnp.float32),
                   0.1 * jax.random.normal(km, (out_ch,), jnp.float32),
                   0.5 + jax.random.uniform(kv, (out_ch,), jnp.float32))
    return p


if __name__ == "__main__":
    key = jax.random.PRNGKey(0)
    k_down, k_up, k_x = jax.random.split(key, 3)

    B, in_ch, H, W = 2, 4, 16, 16
    mid_ch, out_ch = 32, 16

    down_params = init_unet_block_params(k_down, in_ch, mid_ch, down=True)
    up_params = init_unet_block_params(k_up, mid_ch, out_ch, down=False)

    x_nchw = jax.random.normal(k_x, (B, in_ch, H, W), jnp.float32)   # PyTorch layout

    # Stay NHWC end-to-end: one transpose on entry, one on exit of the network.
    x_nhwc = jnp.transpose(x_nchw, (0, 2, 3, 1))

    down_fwd = jax.jit(functools.partial(unet_block_forward_nhwc, down=True,
                                         use_bn=True, use_dropout=False))
    up_fwd = jax.jit(functools.partial(unet_block_forward_nhwc, down=False,
                                       use_bn=True, use_dropout=False))

    y_down = jax.block_until_ready(down_fwd(down_params, x_nhwc))
    y_up = jax.block_until_ready(up_fwd(up_params, y_down))

    assert y_down.shape == (B, H // 2, W // 2, mid_ch)
    assert y_up.shape == (B, H, W, out_ch)
    assert bool(jnp.all(jnp.isfinite(y_down.astype(jnp.float32))))
    assert bool(jnp.all(jnp.isfinite(y_up.astype(jnp.float32))))

    # NCHW wrapper, PyTorch layout parity.
    y_down_nchw = jax.block_until_ready(
        jax.jit(functools.partial(unet_block_forward, down=True))(down_params, x_nchw))
    assert y_down_nchw.shape == (B, mid_ch, H // 2, W // 2)

    # Numerics vs the XLA reference (relative-error metric).
    ref_down = unet_block_reference_nhwc(down_params, x_nhwc, down=True)
    ref_up = unet_block_reference_nhwc(up_params, y_down, down=False)
    _check_close(y_down, ref_down, "down")
    _check_close(y_up, ref_up, "up")

    print("KERNEL_OK")
</pallas_src>

<mosaic_0001>
module attributes {stable_mosaic.version = 11 : i64} {
  func.func @_matmul_resident_kernel(%arg0: i32, %arg1: i32, %arg2: memref<128x64xbf16, #tpu.memory_space<vmem>>, %arg3: memref<64x32xbf16, #tpu.memory_space<vmem>>, %arg4: memref<1x32xf32, #tpu.memory_space<vmem>>, %arg5: memref<128x32xbf16, #tpu.memory_space<vmem>>) attributes {dimension_semantics = [#tpu.dimension_semantics<parallel>, #tpu.dimension_semantics<parallel>], iteration_bounds = array<i64: 1, 1>, scalar_prefetch = 0 : i64, scratch_operands = 0 : i64, tpu.core_type = #tpu.core_type<tc>, window_params = [{transform_indices = @transform_0, window_bounds = array<i64: 128, 64>}, {transform_indices = @transform_1, window_bounds = array<i64: 64, 32>}, {transform_indices = @transform_2, window_bounds = array<i64: 1, 32>}, {transform_indices = @transform_3, window_bounds = array<i64: 128, 32>}]} {
    %c0 = arith.constant 0 : index
    %c0_0 = arith.constant 0 : index
    %0 = vector.load %arg2[%c0, %c0_0] : memref<128x64xbf16, #tpu.memory_space<vmem>>, vector<128x64xbf16>
    %c0_1 = arith.constant 0 : index
    %c0_2 = arith.constant 0 : index
    %1 = vector.load %arg3[%c0_1, %c0_2] : memref<64x32xbf16, #tpu.memory_space<vmem>>, vector<64x32xbf16>
    %cst = arith.constant dense<0.000000e+00> : vector<128x32xf32>
    %2 = tpu.matmul %0, %1, %cst {dimension_numbers = #tpu.dot_dimension_numbers<[1], [0], [0], [1], [0, 0, 1, 1], [], []>} : vector<128x64xbf16>, vector<64x32xbf16>, vector<128x32xf32> -> vector<128x32xf32>
    %c0_3 = arith.constant 0 : index
    %c0_4 = arith.constant 0 : index
    %3 = vector.load %arg4[%c0_3, %c0_4] : memref<1x32xf32, #tpu.memory_space<vmem>>, vector<1x32xf32>
    %4 = vector.broadcast %3 : vector<1x32xf32> to vector<128x32xf32>
    %5 = arith.addf %2, %4 : vector<128x32xf32>
    %cst_5 = arith.constant 0.000000e+00 : f32
    %6 = vector.broadcast %cst_5 : f32 to vector<128x32xf32>
    %7 = arith.cmpf ogt, %5, %6 : vector<128x32xf32>
    %cst_6 = arith.constant 2.000000e-01 : f32
    %8 = vector.broadcast %cst_6 : f32 to vector<128x32xf32>
    %9 = arith.mulf %8, %5 : vector<128x32xf32>
    %10 = arith.select %7, %5, %9 : vector<128x32xi1>, vector<128x32xf32>
    %11 = arith.truncf %10 : vector<128x32xf32> to vector<128x32xbf16>
    %c0_7 = arith.constant 0 : index
    %c0_8 = arith.constant 0 : index
    %12 = vector.load %arg5[%c0_7, %c0_8] : memref<128x32xbf16, #tpu.memory_space<vmem>>, vector<128x32xbf16>
    tpu.vector_store %arg5[%c0_7, %c0_8], %11 {strides = array<i32>} : memref<128x32xbf16, #tpu.memory_space<vmem>>, vector<128x32xbf16>,
    return
  }
  func.func @transform_0(%arg0: i32, %arg1: i32) -> (i32, i32) {
    %c0_i32 = arith.constant 0 : i32
    %c0_i32_0 = arith.constant 0 : i32
    return %arg0, %c0_i32 : i32, i32
  }
  func.func @transform_1(%arg0: i32, %arg1: i32) -> (i32, i32) {
    %c0_i32 = arith.constant 0 : i32
    %c0_i32_0 = arith.constant 0 : i32
    return %c0_i32, %arg1 : i32, i32
  }
  func.func @transform_2(%arg0: i32, %arg1: i32) -> (i32, i32) {
    %c0_i32 = arith.constant 0 : i32
    %c0_i32_0 = arith.constant 0 : i32
    return %c0_i32, %arg1 : i32, i32
  }
  func.func @transform_3(%arg0: i32, %arg1: i32) -> (i32, i32) {
    %c0_i32 = arith.constant 0 : i32
    return %arg0, %arg1 : i32, i32
  }
}

</mosaic_0001>

<bundles_post_ra>
// kernel: unet_block_forward_nhwc.1
= control target key start
LH: loop header
LB: loop body
LE: loop exit
PB: predicated region body
PF: predicated region fallthrough
CT: control target
= control target key end

     0   :  { %vm111_vm0 = vcmask 523264   ;;  %s630_s0 = inlined_call_operand.vmem [shape: bf16[128,64], index: 0, kind: input, shape index: {}]   ;;  %s631_s1 = inlined_call_operand.vmem [shape: bf16[64,32], index: 1, kind: input, shape index: {}]   ;;  %s632_s2 = inlined_call_operand.vmem [shape: f32[1,32], index: 2, kind: input, shape index: {}]   ;;  %s633_s3 = inlined_call_operand.hbm [shape: bf16[128,32], index: 3, kind: output, shape index: {}]  }
   0x1   :  { %v478_v0 = vld [vmem:[%s631_s1] sm:$0xff]   ;;  %v479_v1 = vld [vmem:[%s631_s1 + $0x8] sm:$0xff]   ;;  %v480_v2 = vld [vmem:[%s631_s1 + $0x10] sm:$0xff]  }
   0x2   :  { %443 = vmatprep.subr.bf16.mxu0 %v478_v0  ;;  %467 = vmatprep.subr.bf16.mxu1 %v478_v0  ;;  %v482_v3 = vld [vmem:[%s630_s0] sm:$0xff]   ;;  %v481_v5 = vld [vmem:[%s631_s1 + $0x18] sm:$0xff]  }
   0x3   :  { %444 = vmatpush3.bf16.msra.mxu0 %v478_v0  ;;  %471 = vmatpush3.bf16.msra.mxu1 %v478_v0  ;;  %v483_v4 = vld [vmem:[%s630_s0 + $0x20] sm:$0xff]  }
   0x4   :  { %445 = vmatprep.subr.bf16.mxu0 %v479_v1  ;;  %468 = vmatprep.subr.bf16.mxu1 %v479_v1 }
   0x5   :  { %451 = vmatprep.mubr.msk.bf16.mxu0 %vm111_vm0, %v482_v3  ;;  %459 = vmatprep.mubr.msk.bf16.mxu1 %vm111_vm0, %v483_v4 }
   0x7   :  { %446 = vmatpush3.bf16.msra.mxu0 %v479_v1  ;;  %472 = vmatpush3.bf16.msra.mxu1 %v479_v1 }
   0x8   :  { %447 = vmatprep.subr.bf16.mxu0 %v480_v2  ;;  %469 = vmatprep.subr.bf16.mxu1 %v480_v2 }
   0xb   :  { %448 = vmatpush3.bf16.msra.mxu0 %v480_v2  ;;  %473 = vmatpush3.bf16.msra.mxu1 %v480_v2 }
   0xc   :  { %449 = vmatprep.subr.bf16.mxu0 %v481_v5  ;;  %470 = vmatprep.subr.bf16.mxu1 %v481_v5 }
   0xd   :  { %8 = vsyncpa [#allocation3], 0  ;;  %v484_v6 = vld [vmem:[%s630_s0 + $0x8] sm:$0xff]   ;;  %v486_v8 = vld [vmem:[%s630_s0 + $0x10] sm:$0xff]   ;;  %vm345_vm1 = vcmask 257024  }
   0xe   :  { %v485_v7 = vld [vmem:[%s630_s0 + $0x28] sm:$0xff]   ;;  %v487_v9 = vld [vmem:[%s630_s0 + $0x30] sm:$0xff]   ;;  %v488_v10 = vld [vmem:[%s630_s0 + $0x18] sm:$0xff]  }
   0xf   :  { %450 = vmatpush3.bf16.msra.mxu0 %v481_v5  ;;  %474 = vmatpush3.bf16.msra.mxu1 %v481_v5  ;;  %v489_v11 = vld [vmem:[%s630_s0 + $0x38] sm:$0xff]   ;;  %v584_v12 = vld [vmem:[%s632_s2] ss:$0 sm:$0xff]  ;;  %s514_s0 = smov [#allocation2]  }
  0x10   :  { %s367_s2 = sshll.u32 %s514_s0, 4  ;;  %s368_s2 = int_to_ptr.vmem [resolvable:$true] %s367_s2 }
  0x11   :  { %s490_s10 = scalar_lea.vmem %s368_s2, 1024  ;;  %p495_p1 = scmp.lt.s32.totalorder %s368_s2, %s368_s2 }
  0x12   :  { %452 = vmatmul.mubr.msk.bf16.vlgmr.msra.gmra.mrb[0].mxu0 %vm111_vm0, %v484_v6  ;;  %460 = vmatmul.mubr.msk.bf16.vlgmr.msra.gmra.mrb[0].mxu1 %vm111_vm0, %v485_v7  ;;  %p491_p0 = scmp.ne.s32.totalorder %s368_s2, %s490_s10  ;;  %p496_p2 = scmp.lt.s32.totalorder %s490_s10, %s490_s10 }
  0x13   :  { %455 = vmatprep.mubr.msk.bf16.mxu0 %vm111_vm0, %v486_v8  ;;  %463 = vmatprep.mubr.msk.bf16.mxu1 %vm111_vm0, %v487_v9 }
  0x14   :  { %p497_p3 = por %p496_p2, %p495_p1 }
  0x16   :  { %p498_p4 = pnand %p497_p3, %p491_p0 }
  0x1a   :  { %456 = vmatmul.mubr.msk.bf16.gmra.mrb[4].mxu0 %vm111_vm0, %v488_v10  ;;  %464 = vmatmul.mubr.msk.bf16.gmra.mrb[4].mxu1 %vm111_vm0, %v489_v11 }
  0xe5   :  { %v453_v13 = vpop.f32.mrb[0].mxu0  ;;  %v461_v14 = vpop.f32.mrb[0].mxu1 }
  0xe6   :  { %v179_v15 = vadd.f32 %v453_v13, %v584_v12  ;;  %v211_v16 = vadd.f32 %v461_v14, %v584_v12  ;;  %v170_v17 = vpop.f32.mrb[1].mxu0  ;;  %v202_v18 = vpop.f32.mrb[1].mxu1 }
  0xe7   :  { %v171_v19 = vadd.f32 %v584_v12, %v170_v17  ;;  %v203_v20 = vadd.f32 %v584_v12, %v202_v18  ;;  %v454_v21 = vpop.f32.mrb[2].mxu0  ;;  %v462_v22 = vpop.f32.mrb[2].mxu1 }
  0xe8   :  { %vm235_vm2 = vcmp.gt.f32.partialorder %v179_v15, 0.0  ;;  %v251_v23 = vmul.f32 0.2, %v179_v15  ;;  %vm243_vm3 = vcmp.gt.f32.partialorder %v211_v16, 0.0  ;;  %v259_v24 = vmul.f32 0.2, %v211_v16 }
  0xe9   :  { %vm233_vm4 = vcmp.gt.f32.partialorder %v171_v19, 0.0  ;;  %v249_v25 = vmul.f32 0.2, %v171_v19  ;;  %vm241_vm5 = vcmp.gt.f32.partialorder %v203_v20, 0.0  ;;  %v257_v26 = vmul.f32 0.2, %v203_v20 }
  0xea   :  { %v267_v27 = vsel %vm235_vm2, %v179_v15, %v251_v23  ;;  %v275_v28 = vsel %vm243_vm3, %v211_v16, %v259_v24  ;;  %v182_v29 = vadd.f32 %v454_v21, %v584_v12  ;;  %v214_v30 = vadd.f32 %v462_v22, %v584_v12  ;;  %v173_v31 = vpop.f32.mrb[3].mxu0  ;;  %v205_v32 = vpop.f32.mrb[3].mxu1 }
  0xeb   :  { %v417_v33 = vpack.c.bf16 %v267_v27, %v267_v27  ;;  %v425_v34 = vpack.c.bf16 %v275_v28, %v275_v28  ;;  %v265_v35 = vsel %vm233_vm4, %v171_v19, %v249_v25  ;;  %v273_v36 = vsel %vm241_vm5, %v203_v20, %v257_v26 }
  0xec   :  { %v415_v37 = vpack.c.bf16 %v265_v35, %v265_v35  ;;  %v423_v38 = vpack.c.bf16 %v273_v36, %v273_v36  ;;  %vm236_vm6 = vcmp.gt.f32.partialorder %v182_v29, 0.0  ;;  %v252_v39 = vmul.f32 0.2, %v182_v29 }
  0xed   :  { %348 = vst.msk [vmem:[#allocation2 + $0x8] sm:$0xf] %vm345_vm1, %v417_v33  ;;  %356 = vst.msk [vmem:[#allocation2 + $0x28] sm:$0xf] %vm345_vm1, %v425_v34  ;;  %vm244_vm7 = vcmp.gt.f32.partialorder %v214_v30, 0.0  ;;  %v174_v41 = vadd.f32 %v584_v12, %v173_v31  ;;  %v206_v42 = vadd.f32 %v584_v12, %v205_v32  ;;  %v457_v43 = vpop.f32.mrb[4].mxu0 }
  0xee   :  { %v260_v40 = vmul.f32 0.2, %v214_v30  ;;  %v465_v44 = vpop.f32.mrb[4].mxu1  ;;  %346 = vst.msk [vmem:[#allocation2] sm:$0xf] %vm345_vm1, %v415_v37  ;;  %v268_v45 = vsel %vm236_vm6, %v182_v29, %v252_v39  ;;  %v195_v46 = vadd.f32 %v457_v43, %v584_v12  ;;  %v186_v48 = vpop.f32.mrb[5].mxu0 }
  0xef   :  { %354 = vst.msk [vmem:[#allocation2 + $0x20] sm:$0xf] %vm345_vm1, %v423_v38  ;;  %v227_v47 = vadd.f32 %v465_v44, %v584_v12  ;;  %v218_v49 = vpop.f32.mrb[5].mxu1  ;;  %v418_v50 = vpack.c.bf16 %v268_v45, %v268_v45  ;;  %vm234_vm8 = vcmp.gt.f32.partialorder %v174_v41, 0.0  ;;  %v250_v52 = vmul.f32 0.2, %v174_v41 }
  0xf0   :  { %v276_v51 = vsel %vm244_vm7, %v214_v30, %v260_v40  ;;  %v458_v53 = vpop.f32.mrb[6].mxu0  ;;  %v466_v54 = vpop.f32.mrb[6].mxu1  ;;  %vm242_vm9 = vcmp.gt.f32.partialorder %v206_v42, 0.0  ;;  %v258_v56 = vmul.f32 0.2, %v206_v42  ;;  %vm239_vm10 = vcmp.gt.f32.partialorder %v195_v46, 0.0 }
  0xf1   :  { %v426_v55 = vpack.c.bf16 %v276_v51, %v276_v51  ;;  %v189_v57 = vpop.f32.mrb[7].mxu0  ;;  %v221_v58 = vpop.f32.mrb[7].mxu1  ;;  %349 = vst.msk [vmem:[#allocation2 + $0xc] sm:$0xf] %vm345_vm1, %v418_v50  ;;  %v266_v59 = vsel %vm234_vm8, %v174_v41, %v250_v52  ;;  %v255_v60 = vmul.f32 0.2, %v195_v46  ;;  %v187_v0 = vadd.f32 %v584_v12, %v186_v48 }
  0xf2   :  { %vm247_vm11 = vcmp.gt.f32.partialorder %v227_v47, 0.0  ;;  %v263_v61 = vmul.f32 0.2, %v227_v47  ;;  %v416_v62 = vpack.c.bf16 %v266_v59, %v266_v59  ;;  %v274_v63 = vsel %vm242_vm9, %v206_v42, %v258_v56 }
  0xf3   :  { %357 = vst.msk [vmem:[#allocation2 + $0x2c] sm:$0xf] %vm345_vm1, %v426_v55  ;;  %v219_v1 = vadd.f32 %v584_v12, %v218_v49  ;;  %v424_v2 = vpack.c.bf16 %v274_v63, %v274_v63  ;;  %v271_v3 = vsel %vm239_vm10, %v195_v46, %v255_v60  ;;  %v198_v5 = vadd.f32 %v458_v53, %v584_v12 }
  0xf4   :  { %v279_v4 = vsel %vm247_vm11, %v227_v47, %v263_v61  ;;  %347 = vst.msk [vmem:[#allocation2 + $0x4] sm:$0xf] %vm345_vm1, %v416_v62  ;;  %v421_v6 = vpack.c.bf16 %v271_v3, %v271_v3  ;;  %vm237_vm12 = vcmp.gt.f32.partialorder %v187_v0, 0.0  ;;  %v253_v8 = vmul.f32 0.2, %v187_v0 }
  0xf5   :  { %v429_v7 = vpack.c.bf16 %v279_v4, %v279_v4  ;;  %355 = vst.msk [vmem:[#allocation2 + $0x24] sm:$0xf] %vm345_vm1, %v424_v2  ;;  %vm245_vm13 = vcmp.gt.f32.partialorder %v219_v1, 0.0  ;;  %v261_v9 = vmul.f32 0.2, %v219_v1  ;;  %vm240_vm14 = vcmp.gt.f32.partialorder %v198_v5, 0.0 }
  0xf6   :  { %v256_v10 = vmul.f32 0.2, %v198_v5  ;;  %352 = vst.msk [vmem:[#allocation2 + $0x18] sm:$0xf] %vm345_vm1, %v421_v6  ;;  %v269_v11 = vsel %vm237_vm12, %v187_v0, %v253_v8  ;;  %v230_v13 = vadd.f32 %v466_v54, %v584_v12  ;;  %v190_v14 = vadd.f32 %v584_v12, %v189_v57 }
  0xf7   :  { %360 = vst.msk [vmem:[#allocation2 + $0x38] sm:$0xf] %vm345_vm1, %v429_v7  ;;  %v222_v15 = vadd.f32 %v584_v12, %v221_v58  ;;  %v419_v16 = vpack.c.bf16 %v269_v11, %v269_v11  ;;  %v277_v17 = vsel %vm245_vm13, %v219_v1, %v261_v9 }
  0xf8   :  { %v272_v18 = vsel %vm240_vm14, %v198_v5, %v256_v10  ;;  %v427_v19 = vpack.c.bf16 %v277_v17, %v277_v17  ;;  %vm248_vm15 = vcmp.gt.f32.partialorder %v230_v13, 0.0  ;;  %v264_v21 = vmul.f32 0.2, %v230_v13 }
  0xf9   :  { %v422_v20 = vpack.c.bf16 %v272_v18, %v272_v18  ;;  %350 = vst.msk [vmem:[#allocation2 + $0x10] sm:$0xf] %vm345_vm1, %v419_v16  ;;  %vm238_vm0 = vcmp.gt.f32.partialorder %v190_v14, 0.0  ;;  %v254_v22 = vmul.f32 0.2, %v190_v14  ;;  %vm246_vm2 = vcmp.gt.f32.partialorder %v222_v15, 0.0 }
  0xfa   :  { %v262_v23 = vmul.f32 0.2, %v222_v15  ;;  %358 = vst.msk [vmem:[#allocation2 + $0x30] sm:$0xf] %vm345_vm1, %v427_v19  ;;  %v280_v12 = vsel %vm248_vm15, %v230_v13, %v264_v21 }
  0xfb   :  { %353 = vst.msk [vmem:[#allocation2 + $0x1c] sm:$0xf] %vm345_vm1, %v422_v20  ;;  %v430_v24 = vpack.c.bf16 %v280_v12, %v280_v12  ;;  %v270_v25 = vsel %vm238_vm0, %v190_v14, %v254_v22 }
  0xfc   :  { %v278_v26 = vsel %vm246_vm2, %v222_v15, %v262_v23  ;;  %v420_v27 = vpack.c.bf16 %v270_v25, %v270_v25 }
  0xfd   :  { %v428_v28 = vpack.c.bf16 %v278_v26, %v278_v26  ;;  %361 = vst.msk [vmem:[#allocation2 + $0x3c] sm:$0xf] %vm345_vm1, %v430_v24 }
  0xfe   :  { %351 = vst.msk [vmem:[#allocation2 + $0x14] sm:$0xf] %vm345_vm1, %v420_v27 }
  0xff   :  { %359 = vst.msk [vmem:[#allocation2 + $0x34] sm:$0xf] %vm345_vm1, %v428_v28 }
 0x100   :  { %501 = shalt.err (!%p498_p4)
}
 0x101   :  { %s502_s13 = scalar_lea.hbm %s633_s3, 1024 }
 0x102   :  { %p503_p5 = scmp.ne.s32.totalorder %s633_s3, %s502_s13  ;;  %p506_p6 = scmp.lt.u32.totalorder %s502_s13, %s633_s3 }
 0x104   :  { %p508_p7 = pnand %p506_p6, %p503_p5 }
 0x106   :  { %511 = shalt.err (!%p508_p7)
}
 0x107   :  { %s515_s18 = smov 64   ;;  %s516_s19 = smov 4  }
 0x108   :  { %373 = dma.vmem_to_hbm [thread:$0]  %s368_s2, 1024, %s633_s3, [#allocation3], %s515_s18, %s515_s18, %s516_s19  }
 0x109   :  { %512 = dma.done.wait [#allocation3], 1024  }
 0x10a   :  { %513 = vsyncadd [#allocation3], 4294966272 }
 0x10b   :  { %377 = vsyncpa [#allocation3], 1 }

</bundles_post_ra>
